<compile_context>
chip_gen: v7x
topology: tpu7x:2x2x1
jax: 0.10.0
libtpu: 0.0.40
codegen_flags: <defaults>
</compile_context>

<pallas_src>
import jax
import jax.numpy as jnp
from jax.experimental import pallas as pl
from jax.experimental.pallas import tpu as pltpu


def _round_up(x, m):
    return ((x + m - 1) // m) * m


def _vmem_limit_bytes():
    """Generation-aware scoped-VMEM limit with headroom.

    v5e/v6e (128 MiB physical) -> 96 MiB; v7x (64 MiB per TC) -> 48 MiB;
    unknown / query failure -> 48 MiB (safe everywhere).
    """
    cap = 64 * 1024 * 1024
    try:
        info = pltpu.get_tpu_info()
        cap = int(getattr(info, "vmem_capacity_bytes", cap))
    except Exception:
        pass
    return max(32 * 1024 * 1024, min((cap * 3) // 4, 96 * 1024 * 1024))


def _make_kernel(T, tile_b, batch_size):
    """Build the per-block kernel. T and sizes are static (recompile per distinct T)."""
    T_f = float(T)
    inv_T = 1.0 / T_f
    T_int = int(round(T_f))
    use_int_pow = abs(T_f - T_int) < 1e-12 and 1 <= T_int <= 4

    def kernel(student_ref, teacher_ref, labels_ref, out_ref):
        s = student_ref[...].astype(jnp.float32)   # (TILE_B, C) student logits
        t = teacher_ref[...].astype(jnp.float32)   # (TILE_B, C) teacher logits
        labels = labels_ref[...]                   # (TILE_B, 1) int32
        tb, C = s.shape

        class_ids = jax.lax.broadcasted_iota(jnp.int32, (tb, C), 1)
        label_mask = class_ids == labels

        # --- student: T-scaled log-softmax stats (raw `s` is dead after this scale) ---
        s_T = s * inv_T
        s_max = jnp.max(s_T, axis=1, keepdims=True)              # (TILE_B, 1)
        s_shift = s_T - s_max
        s_exp = jnp.exp(s_shift)
        s_lse = jnp.log(jnp.sum(s_exp, axis=1, keepdims=True))   # log_p = s_shift - s_lse
        # Gather s_shift[row, label] in the same pass; the h_max = T*s_max term of the
        # hard loss cancels algebraically (valid for T > 0).
        gathered_shift = jnp.sum(jnp.where(label_mask, s_shift, 0.0),
                                 axis=1, keepdims=True)          # (TILE_B, 1)

        # --- hard loss rows: cross_entropy(s, label) = h_lse - T * s_shift[label] ---
        if use_int_pow:
            # exp(s_shift)**T by squaring (T in {1..4}); VPU only, no extra EUP pass.
            if T_int == 1:
                h_exp = s_exp
            elif T_int == 2:
                h_exp = s_exp * s_exp
            elif T_int == 3:
                h_exp = (s_exp * s_exp) * s_exp
            else:  # T_int == 4
                sq = s_exp * s_exp
                h_exp = sq * sq
        else:
            h_exp = jnp.exp(s_shift * T_f)
        h_lse = jnp.log(jnp.sum(h_exp, axis=1, keepdims=True))
        nll_rows = h_lse - T_f * gathered_shift                  # (TILE_B, 1)

        # --- teacher softmax stats + fused KL reduce ---
        t_T = t * inv_T
        t_max = jnp.max(t_T, axis=1, keepdims=True)
        t_shift = t_T - t_max
        t_exp = jnp.exp(t_shift)
        t_sum = jnp.sum(t_exp, axis=1, keepdims=True)
        t_lse = jnp.log(t_sum)

        # KL(q || p) per row = [sum_c t_exp*(t_shift - s_shift)] / t_sum + (s_lse - t_lse)
        # (per-row scalar hoisted out of the big (tile_b, C) reduce so it fuses with
        #  the t_exp/t_sum pass; q / log_q never materialized).
        r = jnp.sum(t_exp * (t_shift - s_shift), axis=1, keepdims=True)
        kl_rows = r / t_sum + (s_lse - t_lse)                    # (TILE_B, 1)

        # --- mask padded rows, reduce this block to two scalars ---
        row_ids = (pl.program_id(0) * tile_b
                   + jax.lax.broadcasted_iota(jnp.int32, (tb, 1), 0))
        valid = (row_ids < batch_size).astype(jnp.float32)
        soft_partial = jnp.sum(kl_rows * valid)
        hard_partial = jnp.sum(nll_rows * valid)

        # --- lane-dense partial output: [0,0] = soft sum, [0,1] = hard sum ---
        sub = jax.lax.broadcasted_iota(jnp.int32, (8, 128), 0)
        lane = jax.lax.broadcasted_iota(jnp.int32, (8, 128), 1)
        out_ref[...] = jnp.where(
            (sub == 0) & (lane == 0), soft_partial,
            jnp.where((sub == 0) & (lane == 1), hard_partial, 0.0))

    return kernel


def distillation_loss(student_output, teacher_output, student_labels, T=2.0, alpha=0.5):
    """alpha * KLDiv(log_softmax(s/T), softmax(t/T), 'batchmean') * T^2
       + (1 - alpha) * cross_entropy(s, labels).

    student_output / teacher_output: (B, C) float32 or bfloat16 logits.  bf16 is
    passed through the pallas_call as-is and upcast to f32 inside the kernel — do
    not upcast in the caller (it doubles HBM traffic).  student_labels: (B,) ints.
    Requires T > 0 (the in-kernel reuse of T-scaled stats assumes it).
    """
    if not float(T) > 0.0:
        raise ValueError(f"DistillationLoss requires T > 0, got T={T}")

    B, C = student_output.shape
    labels_2d = student_labels.astype(jnp.int32).reshape(B, 1)

    # --- batch tile: largest power-of-two (<= 1024) row count whose double-buffered
    #     inputs PLUS ~6 (tile_b, C) f32 in-kernel temporaries fit the VMEM budget ---
    vmem_limit = _vmem_limit_bytes()
    budget = vmem_limit - 8 * 1024 * 1024            # compiler / pipeline headroom
    in_bytes_per_row = C * (student_output.dtype.itemsize
                            + teacher_output.dtype.itemsize)
    tmp_bytes_per_row = 6 * C * 4                    # f32 temps across class reduces
    bytes_per_row = 2 * in_bytes_per_row + tmp_bytes_per_row
    tile_b = 1024
    while tile_b > 8 and tile_b * bytes_per_row > budget:
        tile_b //= 2

    b_pad8 = _round_up(B, 8)
    if b_pad8 <= tile_b:
        if b_pad8 >= 16:
            # One block would fit, but keep >= 2 blocks so both TensorCores (v7x)
            # get work on the "parallel" batch axis.
            tile_b = _round_up(pl.cdiv(b_pad8, 2), 8)
        else:
            tile_b = b_pad8

    num_blocks = pl.cdiv(B, tile_b)
    B_pad = num_blocks * tile_b
    if B_pad != B:
        pad = B_pad - B
        student_output = jnp.pad(student_output, ((0, pad), (0, 0)))
        teacher_output = jnp.pad(teacher_output, ((0, pad), (0, 0)))
        labels_2d = jnp.pad(labels_2d, ((0, pad), (0, 0)))

    T_f = float(T)
    T_int = int(round(T_f))
    n_exp_passes = 2 if (abs(T_f - T_int) < 1e-12 and 1 <= T_int <= 4) else 3

    kernel = _make_kernel(T_f, tile_b, B)

    partials = pl.pallas_call(
        kernel,
        out_shape=jax.ShapeDtypeStruct((num_blocks * 8, 128), jnp.float32),
        grid=(num_blocks,),
        in_specs=[
            pl.BlockSpec((tile_b, C), lambda i: (i, 0)),
            pl.BlockSpec((tile_b, C), lambda i: (i, 0)),
            pl.BlockSpec((tile_b, 1), lambda i: (i, 0)),
        ],
        out_specs=pl.BlockSpec((8, 128), lambda i: (i, 0)),
        compiler_params=pltpu.CompilerParams(
            dimension_semantics=("parallel",),
            vmem_limit_bytes=vmem_limit,
        ),
        cost_estimate=pl.CostEstimate(
            flops=20 * B_pad * C,
            transcendentals=n_exp_passes * B_pad * C,
            bytes_accessed=B_pad * in_bytes_per_row + B_pad * 4
            + num_blocks * 8 * 128 * 4,
        ),
    )(student_output, teacher_output, labels_2d)

    # Tiny final reduction + mixing in plain JAX (keeps the kernel embarrassingly
    # parallel over batch blocks; entries other than [0,0]/[0,1] of each slab are 0).
    soft_sum = jnp.sum(partials[:, 0])
    hard_sum = jnp.sum(partials[:, 1])
    inv_B = 1.0 / B
    soft_loss = soft_sum * inv_B * (T_f * T_f)   # batchmean KL * T^2
    hard_loss = hard_sum * inv_B                 # mean cross-entropy
    return float(alpha) * soft_loss + (1.0 - float(alpha)) * hard_loss


def _reference_loss(student, teacher, labels, T=2.0, alpha=0.5):
    s32 = student.astype(jnp.float32)
    t32 = teacher.astype(jnp.float32)
    log_p = jax.nn.log_softmax(s32 / T, axis=1)
    q = jax.nn.softmax(t32 / T, axis=1)
    kl = jnp.sum(q * (jnp.log(q) - log_p)) / student.shape[0]
    soft = kl * T * T
    logp_hard = jax.nn.log_softmax(s32, axis=1)
    hard = -jnp.mean(jnp.take_along_axis(logp_hard, labels[:, None], axis=1))
    return alpha * soft + (1.0 - alpha) * hard


if __name__ == "__main__":
    key = jax.random.PRNGKey(0)
    k1, k2, k3 = jax.random.split(key, 3)

    # Small f32 case (single 8-row block).
    B, C = 8, 32
    student = jax.random.normal(k1, (B, C), dtype=jnp.float32)
    teacher = jax.random.normal(k2, (B, C), dtype=jnp.float32)
    labels = jax.random.randint(k3, (B,), 0, C, dtype=jnp.int32)

    loss = distillation_loss(student, teacher, labels, T=2.0, alpha=0.5)
    jax.block_until_ready(loss)
    ref = _reference_loss(student, teacher, labels, T=2.0, alpha=0.5)
    assert jnp.allclose(loss, ref, rtol=1e-5, atol=1e-5), (loss, ref)

    # Non-multiple-of-8 batch with bf16 logits: exercises padding/masking, the
    # forced >=2-block split, the int-T power path (T=3), and bf16 pass-through.
    B2, C2 = 20, 48
    k4, k5, k6 = jax.random.split(k3, 3)
    student2 = jax.random.normal(k4, (B2, C2), dtype=jnp.float32).astype(jnp.bfloat16)
    teacher2 = jax.random.normal(k5, (B2, C2), dtype=jnp.float32).astype(jnp.bfloat16)
    labels2 = jax.random.randint(k6, (B2,), 0, C2, dtype=jnp.int32)

    loss2 = distillation_loss(student2, teacher2, labels2, T=3.0, alpha=0.3)
    jax.block_until_ready(loss2)
    ref2 = _reference_loss(student2, teacher2, labels2, T=3.0, alpha=0.3)
    assert jnp.allclose(loss2, ref2, rtol=1e-4, atol=1e-4), (loss2, ref2)

    print("KERNEL_OK")
</pallas_src>

<mosaic_0001>
module attributes {stable_mosaic.version = 11 : i64} {
  func.func @kernel(%arg0: i32, %arg1: memref<8x32xf32, #tpu.memory_space<vmem>>, %arg2: memref<8x32xf32, #tpu.memory_space<vmem>>, %arg3: memref<8x1xi32, #tpu.memory_space<vmem>>, %arg4: memref<8x128xf32, #tpu.memory_space<vmem>>) attributes {dimension_semantics = [#tpu.dimension_semantics<parallel>], iteration_bounds = array<i64: 1>, scalar_prefetch = 0 : i64, scratch_operands = 0 : i64, tpu.core_type = #tpu.core_type<tc>, window_params = [{transform_indices = @transform_0, window_bounds = array<i64: 8, 32>}, {transform_indices = @transform_1, window_bounds = array<i64: 8, 32>}, {transform_indices = @transform_2, window_bounds = array<i64: 8, 1>}, {transform_indices = @transform_3, window_bounds = array<i64: 8, 128>}]} {
    %c0 = arith.constant 0 : index
    %c0_0 = arith.constant 0 : index
    %0 = vector.load %arg1[%c0, %c0_0] : memref<8x32xf32, #tpu.memory_space<vmem>>, vector<8x32xf32>
    %c0_1 = arith.constant 0 : index
    %c0_2 = arith.constant 0 : index
    %1 = vector.load %arg2[%c0_1, %c0_2] : memref<8x32xf32, #tpu.memory_space<vmem>>, vector<8x32xf32>
    %c0_3 = arith.constant 0 : index
    %c0_4 = arith.constant 0 : index
    %2 = vector.load %arg3[%c0_3, %c0_4] : memref<8x1xi32, #tpu.memory_space<vmem>>, vector<8x1xi32>
    %3 = tpu.iota {dimensions = array<i32: 1>} : vector<8x32xi32>
    %4 = vector.broadcast %2 : vector<8x1xi32> to vector<8x32xi32>
    %5 = arith.cmpi eq, %3, %4 : vector<8x32xi32>
    %cst = arith.constant 5.000000e-01 : f32
    %6 = vector.broadcast %cst : f32 to vector<8x32xf32>
    %7 = arith.mulf %0, %6 : vector<8x32xf32>
    %cst_5 = arith.constant dense<0xFF800000> : vector<8xf32>
    %8 = vector.multi_reduction <maximumf>, %7, %cst_5 [1] : vector<8x32xf32> to vector<8xf32>
    %9 = vector.shape_cast %8 : vector<8xf32> to vector<8x1xf32>
    %10 = vector.broadcast %9 : vector<8x1xf32> to vector<8x32xf32>
    %11 = arith.subf %7, %10 : vector<8x32xf32>
    %12 = math.exp %11 : vector<8x32xf32>
    %cst_6 = arith.constant dense<0.000000e+00> : vector<8xf32>
    %13 = vector.multi_reduction <add>, %12, %cst_6 [1] : vector<8x32xf32> to vector<8xf32>
    %14 = vector.shape_cast %13 : vector<8xf32> to vector<8x1xf32>
    %15 = math.log %14 : vector<8x1xf32>
    %cst_7 = arith.constant 0.000000e+00 : f32
    %16 = vector.broadcast %cst_7 : f32 to vector<8x32xf32>
    %17 = arith.select %5, %11, %16 : vector<8x32xi1>, vector<8x32xf32>
    %cst_8 = arith.constant dense<0.000000e+00> : vector<8xf32>
    %18 = vector.multi_reduction <add>, %17, %cst_8 [1] : vector<8x32xf32> to vector<8xf32>
    %19 = vector.shape_cast %18 : vector<8xf32> to vector<8x1xf32>
    %20 = arith.mulf %12, %12 : vector<8x32xf32>
    %cst_9 = arith.constant dense<0.000000e+00> : vector<8xf32>
    %21 = vector.multi_reduction <add>, %20, %cst_9 [1] : vector<8x32xf32> to vector<8xf32>
    %22 = vector.shape_cast %21 : vector<8xf32> to vector<8x1xf32>
    %23 = math.log %22 : vector<8x1xf32>
    %cst_10 = arith.constant 2.000000e+00 : f32
    %24 = vector.broadcast %cst_10 : f32 to vector<8x1xf32>
    %25 = arith.mulf %24, %19 : vector<8x1xf32>
    %26 = arith.subf %23, %25 : vector<8x1xf32>
    %cst_11 = arith.constant 5.000000e-01 : f32
    %27 = vector.broadcast %cst_11 : f32 to vector<8x32xf32>
    %28 = arith.mulf %1, %27 : vector<8x32xf32>
    %cst_12 = arith.constant dense<0xFF800000> : vector<8xf32>
    %29 = vector.multi_reduction <maximumf>, %28, %cst_12 [1] : vector<8x32xf32> to vector<8xf32>
    %30 = vector.shape_cast %29 : vector<8xf32> to vector<8x1xf32>
    %31 = vector.broadcast %30 : vector<8x1xf32> to vector<8x32xf32>
    %32 = arith.subf %28, %31 : vector<8x32xf32>
    %33 = math.exp %32 : vector<8x32xf32>
    %cst_13 = arith.constant dense<0.000000e+00> : vector<8xf32>
    %34 = vector.multi_reduction <add>, %33, %cst_13 [1] : vector<8x32xf32> to vector<8xf32>
    %35 = vector.shape_cast %34 : vector<8xf32> to vector<8x1xf32>
    %36 = math.log %35 : vector<8x1xf32>
    %37 = arith.subf %32, %11 : vector<8x32xf32>
    %38 = arith.mulf %33, %37 : vector<8x32xf32>
    %cst_14 = arith.constant dense<0.000000e+00> : vector<8xf32>
    %39 = vector.multi_reduction <add>, %38, %cst_14 [1] : vector<8x32xf32> to vector<8xf32>
    %40 = vector.shape_cast %39 : vector<8xf32> to vector<8x1xf32>
    %41 = arith.divf %40, %35 : vector<8x1xf32>
    %42 = arith.subf %15, %36 : vector<8x1xf32>
    %43 = arith.addf %41, %42 : vector<8x1xf32>
    %c8_i32 = arith.constant 8 : i32
    %44 = arith.muli %arg0, %c8_i32 : i32
    %45 = tpu.iota {dimensions = array<i32: 0>} : vector<8x1xi32>
    %46 = vector.broadcast %44 : i32 to vector<8x1xi32>
    %47 = arith.addi %46, %45 : vector<8x1xi32>
    %c8_i32_15 = arith.constant 8 : i32
    %48 = vector.broadcast %c8_i32_15 : i32 to vector<8x1xi32>
    %49 = arith.cmpi slt, %47, %48 : vector<8x1xi32>
    %50 = arith.extui %49 : vector<8x1xi1> to vector<8x1xi32>
    %51 = arith.sitofp %50 : vector<8x1xi32> to vector<8x1xf32>
    %52 = arith.mulf %43, %51 : vector<8x1xf32>
    %53 = vector.shape_cast %52 : vector<8x1xf32> to vector<1x8x1xf32>
    %cst_16 = arith.constant dense<0.000000e+00> : vector<1xf32>
    %54 = vector.multi_reduction <add>, %53, %cst_16 [1, 2] : vector<1x8x1xf32> to vector<1xf32>
    %55 = vector.shape_cast %54 : vector<1xf32> to vector<1x1x1xf32>
    %56 = vector.extract %55[0, 0, 0] : f32 from vector<1x1x1xf32>
    %57 = arith.mulf %26, %51 : vector<8x1xf32>
    %58 = vector.shape_cast %57 : vector<8x1xf32> to vector<1x8x1xf32>
    %cst_17 = arith.constant dense<0.000000e+00> : vector<1xf32>
    %59 = vector.multi_reduction <add>, %58, %cst_17 [1, 2] : vector<1x8x1xf32> to vector<1xf32>
    %60 = vector.shape_cast %59 : vector<1xf32> to vector<1x1x1xf32>
    %61 = vector.extract %60[0, 0, 0] : f32 from vector<1x1x1xf32>
    %62 = tpu.iota {dimensions = array<i32: 0>} : vector<8x128xi32>
    %63 = tpu.iota {dimensions = array<i32: 1>} : vector<8x128xi32>
    %c0_i32 = arith.constant 0 : i32
    %64 = vector.broadcast %c0_i32 : i32 to vector<8x128xi32>
    %65 = arith.cmpi eq, %62, %64 : vector<8x128xi32>
    %c0_i32_18 = arith.constant 0 : i32
    %66 = vector.broadcast %c0_i32_18 : i32 to vector<8x128xi32>
    %67 = arith.cmpi eq, %63, %66 : vector<8x128xi32>
    %68 = arith.andi %65, %67 : vector<8x128xi1>
    %c0_i32_19 = arith.constant 0 : i32
    %69 = vector.broadcast %c0_i32_19 : i32 to vector<8x128xi32>
    %70 = arith.cmpi eq, %62, %69 : vector<8x128xi32>
    %c1_i32 = arith.constant 1 : i32
    %71 = vector.broadcast %c1_i32 : i32 to vector<8x128xi32>
    %72 = arith.cmpi eq, %63, %71 : vector<8x128xi32>
    %73 = arith.andi %70, %72 : vector<8x128xi1>
    %cst_20 = arith.constant 0.000000e+00 : f32
    %74 = vector.broadcast %61 : f32 to vector<8x128xf32>
    %75 = vector.broadcast %cst_20 : f32 to vector<8x128xf32>
    %76 = arith.select %73, %74, %75 : vector<8x128xi1>, vector<8x128xf32>
    %77 = vector.broadcast %56 : f32 to vector<8x128xf32>
    %78 = arith.select %68, %77, %76 : vector<8x128xi1>, vector<8x128xf32>
    %c0_21 = arith.constant 0 : index
    %c0_22 = arith.constant 0 : index
    %79 = vector.load %arg4[%c0_21, %c0_22] : memref<8x128xf32, #tpu.memory_space<vmem>>, vector<8x128xf32>
    tpu.vector_store %arg4[%c0_21, %c0_22], %78 {strides = array<i32>} : memref<8x128xf32, #tpu.memory_space<vmem>>, vector<8x128xf32>,
    return
  }
  func.func @transform_0(%arg0: i32) -> (i32, i32) {
    %c0_i32 = arith.constant 0 : i32
    %c0_i32_0 = arith.constant 0 : i32
    return %arg0, %c0_i32 : i32, i32
  }
  func.func @transform_1(%arg0: i32) -> (i32, i32) {
    %c0_i32 = arith.constant 0 : i32
    %c0_i32_0 = arith.constant 0 : i32
    return %arg0, %c0_i32 : i32, i32
  }
  func.func @transform_2(%arg0: i32) -> (i32, i32) {
    %c0_i32 = arith.constant 0 : i32
    %c0_i32_0 = arith.constant 0 : i32
    return %arg0, %c0_i32 : i32, i32
  }
  func.func @transform_3(%arg0: i32) -> (i32, i32) {
    %c0_i32 = arith.constant 0 : i32
    %c0_i32_0 = arith.constant 0 : i32
    return %arg0, %c0_i32 : i32, i32
  }
}

</mosaic_0001>

<bundles_post_ra>
// kernel: tpu_custom_call.1
= control target key start
LH: loop header
LB: loop body
LE: loop exit
PB: predicated region body
PF: predicated region fallthrough
CT: control target
= control target key end

     0   :  { %8 = vsyncpa [#allocation3], 0  ;;  %s272_s0 = inlined_call_operand.vmem [shape: f32[8,32], index: 0, kind: input, shape index: {}]   ;;  %s273_s1 = inlined_call_operand.hbm [shape: f32[8,32], index: 1, kind: input, shape index: {}]   ;;  %s274_s2 = inlined_call_operand.vmem [shape: s32[8,1], index: 2, kind: input, shape index: {}]   ;;  %s275_s3 = inlined_call_operand.hbm [shape: f32[8,128], index: 3, kind: output, shape index: {}]  }
   0x1   :  { %9 = vsyncpa [#allocation4], 0  ;;  %s207_s12 = smov [#allocation2]   ;;  %s159_s16 = scalar_lea.hbm %s273_s1, 128 }
   0x2   :  { %s18_s13 = sshll.u32 %s207_s12, 4  ;;  %p160_p0 = scmp.ne.s32.totalorder %s273_s1, %s159_s16  ;;  %s19_s13 = int_to_ptr.vmem [resolvable:$true] %s18_s13 }
   0x3   :  { %p163_p1 = scmp.lt.u32.totalorder %s159_s16, %s273_s1 }
   0x5   :  { %p165_p2 = pnand %p163_p1, %p160_p0 }
   0x7   :  { %168 = shalt.err (!%p165_p2)
}
   0x8   :  { %s169_s21 = scalar_lea.vmem %s19_s13, 128  ;;  %p174_p4 = scmp.lt.s32.totalorder %s19_s13, %s19_s13 }
   0x9   :  { %p170_p3 = scmp.ne.s32.totalorder %s19_s13, %s169_s21  ;;  %p175_p5 = scmp.lt.s32.totalorder %s169_s21, %s169_s21 }
   0xb   :  { %p176_p6 = por %p175_p5, %p174_p4 }
   0xd   :  { %p177_p7 = pnand %p176_p6, %p170_p3 }
   0xf   :  { %180 = shalt.err (!%p177_p7)
}
  0x10   :  { %21 = dma.hbm_to_vmem [thread:$0]  %s273_s1, 128, %s19_s13, [#allocation3]  }
  0x11   :  { %203 = dma.done.wait [#allocation3], 128  }
  0x12   :  { %204 = vsyncadd [#allocation3], 4294967168  ;;  %v208_v0 = vmov 0   ;;  %v27_v1 = vld [vmem:[%s272_s0] sm:$0xff]  ;;  %vm37_vm0 = vcmask 261120   ;;  %v30_v14 = vlaneseq  ;;  %vm91_vm2 = vcmask 7168  }
  0x13   :  { %145 = vset.pattern.permute.xlu1 %v208_v0  ;;  %146 = vset.pattern.permute.xlu0 %v208_v0  ;;  %v28_v2 = vld [vmem:[#allocation2] sm:$0xff]  ;;  %v36_v4 = vmul.f32 0.5, %v27_v1  ;;  %s209_s1 = smov [#allocation5]  }
  0x14   :  { %v29_v3 = vld [vmem:[%s274_s2] sm:$0xff]  ;;  %v61_v5 = vmul.f32 0.5, %v28_v2  ;;  %v251_v17 = vand.u32 127, %v30_v14  ;;  %v84_v61 = vshrl.u32 %v30_v14, 7  ;;  %s129_s2 = sshll.u32 %s209_s1, 4  ;;  %s130_s2 = int_to_ptr.vmem [resolvable:$true] %s129_s2 }
  0x15   :  { %33 = vperm.xlu1 %145, %v29_v3   ;;  %v38_v6 = vsel %vm37_vm0, %v36_v4, -inf  ;;  %s181_s29 = scalar_lea.vmem %s130_s2, 128  ;;  %p186_p9 = scmp.lt.s32.totalorder %s130_s2, %s130_s2 }
  0x16   :  { %39 = vmax.xlane.f32.xlu0 %v38_v6  ;;  %v62_v7 = vsel %vm37_vm0, %v61_v5, -inf  ;;  %vm113_vm3 = vcmp.eq.s32.totalorder %v84_v61, 0  ;;  %vm116_vm4 = vcmp.eq.s32.totalorder %v251_v17, 1  ;;  %vm114_vm5 = vcmp.eq.s32.totalorder %v251_v17, 0  ;;  %p182_p8 = scmp.ne.s32.totalorder %s130_s2, %s181_s29  ;;  %p187_p10 = scmp.lt.s32.totalorder %s181_s29, %s181_s29 }
  0x17   :  { %vm117_vm6 = vmand %vm113_vm3, %vm116_vm4 }
  0x18   :  { %vm115_vm7 = vmand %vm113_vm3, %vm114_vm5  ;;  %p188_p11 = por %p187_p10, %p186_p9 }
  0x1a   :  { %63 = vmax.xlane.f32.xlu0 %v62_v7  ;;  %p189_p12 = pnand %p188_p11, %p182_p8 }
  0x94   :  { %v34_v19 = vpop.permute.xlu1 %33 }
  0x95   :  { %vm35_vm1 = vcmp.eq.s32.totalorder %v251_v17, %v34_v19 }
  0xa3   :  { %v40_v8 = vpop.xlane.xlu0 %39 }
  0xa4   :  { %v41_v9 = vsub.f32 %v36_v4, %v40_v8 }
  0xa6   :  { %v42_v10 = vmul.f32 1.442695, %v41_v9  ;;  %v49_v23 = vsel %vm35_vm1, %v41_v9, 0.0 }
  0xa7   :  { %v64_v11 = vpop.xlane.xlu0 %63  ;;  %v50_v25 = vsel %vm37_vm0, %v49_v23, 0.0 }
  0xa8   :  { %147 = vpow2.f32 %v42_v10  ;;  %v65_v12 = vsub.f32 %v61_v5, %v64_v11 }
  0xaa   :  { %v66_v13 = vmul.f32 1.442695, %v65_v12  ;;  %v73_v24 = vsub.f32 %v65_v12, %v41_v9 }
  0xac   :  { %149 = vpow2.f32 %v66_v13 }
  0xb2   :  { %v148_v15 = vpop.eup %147 }
  0xb3   :  { %v44_v16 = vsel %vm37_vm0, %v148_v15, 0.0  ;;  %v53_v21 = vmul.f32 %v148_v15, %v148_v15 }
  0xb4   :  { %45 = vadd.xlane.f32.xlu1 %v44_v16 }
  0xb5   :  { %v54_v22 = vsel %vm37_vm0, %v53_v21, 0.0 }
  0xb6   :  { %v150_v18 = vpop.eup %149 }
  0xb7   :  { %v68_v20 = vsel %vm37_vm0, %v150_v18, 0.0  ;;  %v74_v26 = vmul.f32 %v150_v18, %v73_v24 }
  0xb8   :  { %69 = vadd.xlane.f32.xlu0 %v68_v20 }
  0xb9   :  { %v75_v27 = vsel %vm37_vm0, %v74_v26, 0.0 }
  0xbc   :  { %55 = vadd.xlane.f32.xlu0 %v54_v22 }
  0xc0   :  { %51 = vadd.xlane.f32.xlu0 %v50_v25 }
  0xc4   :  { %76 = vadd.xlane.f32.xlu0 %v75_v27 }
 0x141   :  { %v46_v28 = vpop.xlane.xlu1 %45 }
 0x142   :  { %151 = vlog2.f32 %v46_v28 }
 0x145   :  { %v70_v29 = vpop.xlane.xlu0 %69 }
 0x146   :  { %153 = vlog2.f32 %v70_v29 }
 0x147   :  { %155 = vrcp.f32 %v70_v29 }
 0x149   :  { %v56_v30 = vpop.xlane.xlu0 %55 }
 0x14a   :  { %157 = vlog2.f32 %v56_v30 }
 0x14c   :  { %v152_v32 = vpop.eup %151 }
 0x14d   :  { %v52_v31 = vpop.xlane.xlu0 %51  ;;  %v48_v35 = vmul.f32 0.6931472, %v152_v32 }
 0x14e   :  { %v59_v42 = vmul.f32 2.0, %v52_v31 }
 0x150   :  { %v154_v33 = vpop.eup %153 }
 0x151   :  { %v156_v34 = vpop.eup %155  ;;  %v72_v36 = vmul.f32 0.6931472, %v154_v33  ;;  %v77_v37 = vpop.xlane.xlu0 %76 }
 0x152   :  { %v79_v38 = vmul.f32 %v156_v34, %v77_v37 }
 0x153   :  { %v80_v39 = vsub.f32 %v48_v35, %v72_v36 }
 0x154   :  { %v158_v40 = vpop.eup %157 }
 0x155   :  { %v58_v41 = vmul.f32 0.6931472, %v158_v40  ;;  %v81_v43 = vadd.f32 %v80_v39, %v79_v38 }
 0x157   :  { %v92_v44 = vsel %vm91_vm2, %v81_v43, 0.0  ;;  %v60_v45 = vsub.f32 %v58_v41, %v59_v42 }
 0x158   :  { %93 = vadd.xlane.f32.xlu0 %v92_v44 }
 0x159   :  { %v103_v46 = vsel %vm91_vm2, %v60_v45, 0.0 }
 0x15c   :  { %104 = vadd.xlane.f32.xlu0 %v103_v46 }
 0x1e5   :  { %v94_v47 = vpop.xlane.xlu0 %93 }
 0x1e6   :  { %v95_v48 = vrot.slane %v94_v47, 4 }
 0x1e8   :  { %v96_v49 = vadd.f32 %v95_v48, %v94_v47 }
 0x1e9   :  { %v105_v50 = vpop.xlane.xlu0 %104 }
 0x1ea   :  { %v97_v51 = vrot.slane %v96_v49, 2  ;;  %v106_v52 = vrot.slane %v105_v50, 4 }
 0x1ec   :  { %v107_v53 = vadd.f32 %v106_v52, %v105_v50  ;;  %v98_v54 = vadd.f32 %v97_v51, %v96_v49 }
 0x1ee   :  { %v108_v55 = vrot.slane %v107_v53, 2  ;;  %v99_v56 = vrot.slane %v98_v54, 1 }
 0x1f0   :  { %v109_v57 = vadd.f32 %v108_v55, %v107_v53  ;;  %v100_v58 = vadd.f32 %v99_v56, %v98_v54 }
 0x1f2   :  { %138 = vpush %v100_v58  ;;  %v110_v59 = vrot.slane %v109_v57, 1 }
 0x1f4   :  { %v111_v60 = vadd.f32 %v110_v59, %v109_v57 }
 0x1f6   :  { %140 = vpush %v111_v60 }
 0x223   :  { %s139_s0 = spop %138 }
 0x224   :  { %v120_v63 = vstv %s139_s0 }
 0x227   :  { %s141_s28 = spop %140 }
 0x228   :  { %v118_v62 = vstv %s141_s28 }
 0x229   :  { %v119_v0 = vsel %vm117_vm6, %v118_v62, 0.0 }
 0x22a   :  { %v121_v1 = vsel %vm115_vm7, %v120_v63, %v119_v0 }
 0x22b   :  { %122 = vst [vmem:[#allocation5] sm:$0xff] %v121_v1 }
 0x22c   :  { %192 = shalt.err (!%p189_p12)
}
 0x22d   :  { %s193_s5 = scalar_lea.hbm %s275_s3, 128 }
 0x22e   :  { %p194_p13 = scmp.ne.s32.totalorder %s275_s3, %s193_s5  ;;  %p197_p0 = scmp.lt.u32.totalorder %s193_s5, %s275_s3 }
 0x230   :  { %p199_p1 = pnand %p197_p0, %p194_p13 }
 0x232   :  { %202 = shalt.err (!%p199_p1)
}
 0x233   :  { %132 = dma.vmem_to_hbm [thread:$0]  %s130_s2, 128, %s275_s3, [#allocation4]  }
 0x234   :  { %205 = dma.done.wait [#allocation4], 128  }
 0x235   :  { %206 = vsyncadd [#allocation4], 4294967168 }
 0x236   :  { %136 = vsyncpa [#allocation3], 1 }
 0x237   :  { %137 = vsyncpa [#allocation4], 1 }

</bundles_post_ra>
